<compile_context>
chip_gen: v6e
topology: v6e:2x2x1
jax: 0.10.0
libtpu: 0.0.40
codegen_flags: <defaults>
</compile_context>

<pallas_src>
import functools

import jax
import jax.numpy as jnp
from jax import lax
from jax.experimental import pallas as pl
from jax.experimental.pallas import tpu as pltpu

SEG_WEIGHT = 1.0
ATT_WEIGHT = 0.1
FORENSIC_WEIGHT = 0.5

_LANE = 512  # lane-dense last dim (multiple of 128)


def _cdiv(a, b):
    return -(-a // b)


def _round_up(x, m):
    return _cdiv(x, m) * m


def _vmem_capacity_bytes():
    try:
        cap = int(pltpu.get_tpu_info().vmem_capacity_bytes)
        if cap > 0:
            return cap
    except Exception:
        pass
    return 64 << 20  # conservative fallback (v7x per-TC VMEM)


def _prep_stream(x):
    """Flatten to lane-dense (rows8, _LANE); pad only the ragged tail."""
    flat = x.reshape(-1)
    size = int(flat.shape[0])
    rows8 = max(_round_up(_cdiv(size, _LANE), 8), 8)
    padded = rows8 * _LANE
    if padded != size:
        # Small tail pad (< 8*_LANE elements). Streams whose size is already a
        # multiple of 8*_LANE are reshaped in place with no extra HBM traffic.
        flat = jnp.pad(flat, (0, padded - size))
    return flat.reshape(rows8, _LANE), rows8


def _fold_rows(x2d, bm):
    """(bm, _LANE) -> (8, _LANE) partial sums via sublane-aligned adds (VALU only)."""
    part = x2d[0:8, :]
    for k in range(1, bm // 8):
        part = part + x2d[k * 8:(k + 1) * 8, :]
    return part


def _loss_kernel(n_att, tps, total_tiles, inv_n_seg,
                 seg_bm, seg_rows8, seg_tiles, att_params,
                 logits_ref, onehot_ref, pf_ref, tf_ref,
                 pseg_ref, tseg_ref, *rest):
    att_refs = rest[:n_att]
    out_ref = rest[n_att]
    acc_seg = rest[n_att + 1]   # (8, _LANE) f32 VMEM scratch
    acc_att = rest[n_att + 2]   # (8, _LANE) f32 VMEM scratch

    c = pl.program_id(0)        # parallel slice (TensorCore on v7x megacore)
    t = pl.program_id(1)        # streaming step within the slice
    g = c * tps + t             # global tile index

    @pl.when(t == 0)
    def _init():
        acc_seg[...] = jnp.zeros_like(acc_seg)
        acc_att[...] = jnp.zeros_like(acc_att)

    def tail_mask(bm, rows8):
        lim = rows8 - g * bm
        iota = lax.broadcasted_iota(jnp.int32, (bm, _LANE), 0)
        return iota < lim

    # ---- segmentation BCE partial sums ----
    def seg_body():
        # Single-log BCE: exact for binary targets (true_seg in {0,1}); padded
        # zeros (p=0, t=0) give q=1 -> log q = 0 -> zero contribution.
        # TODO(synk): soft BCE targets would need the two-log clamped form.
        p = pseg_ref[...].astype(jnp.float32)
        tt = tseg_ref[...].astype(jnp.float32)
        q = jnp.where(tt >= 0.5, p, 1.0 - p)
        logq = jnp.maximum(jnp.log(q), -100.0)
        if seg_rows8 % seg_bm != 0:
            logq = jnp.where(tail_mask(seg_bm, seg_rows8), logq, 0.0)
        acc_seg[...] += _fold_rows(logq, seg_bm)

    if seg_tiles < total_tiles:
        pl.when(g < seg_tiles)(seg_body)
    else:
        seg_body()

    # ---- attention-map partial sums (per-map normalization) ----
    for m in range(n_att):
        bm_m, rows8_m, tiles_m, inv_m = att_params[m]

        def att_body(m=m, bm_m=bm_m, rows8_m=rows8_m, inv_m=inv_m):
            a = att_refs[m][...].astype(jnp.float32)
            if rows8_m % bm_m != 0:
                a = jnp.where(tail_mask(bm_m, rows8_m), a, 0.0)
            acc_att[...] += _fold_rows(a, bm_m) * inv_m

        if tiles_m < total_tiles:
            pl.when(g < tiles_m)(att_body)
        else:
            att_body()

    # ---- finalize: CE + MSE + weighted combine (last step of each slice) ----
    @pl.when(t == tps - 1)
    def _finalize():
        x = logits_ref[...].astype(jnp.float32)                 # (B, C)
        oh = onehot_ref[...].astype(jnp.float32)                # (B, C)
        mx = jnp.max(x, axis=-1, keepdims=True)
        lse = jnp.log(jnp.sum(jnp.exp(x - mx), axis=-1, keepdims=True)) + mx
        picked = jnp.sum(oh * x, axis=-1, keepdims=True)
        cls_loss = jnp.mean(lse - picked)

        d = pf_ref[...].astype(jnp.float32) - tf_ref[...].astype(jnp.float32)
        forensic_loss = jnp.mean(d * d)

        seg_loss = -jnp.sum(acc_seg[...]) * inv_n_seg           # negation folded here
        att_loss = jnp.sum(acc_att[...])

        # classification + forensic terms contributed by slice 0 only
        head = jnp.where(c == 0, cls_loss + FORENSIC_WEIGHT * forensic_loss, 0.0)
        total = head + SEG_WEIGHT * seg_loss + ATT_WEIGHT * att_loss
        out_ref[...] = jnp.zeros((8, 128), jnp.float32) + total


def hybrid_forgery_detection_loss(pred_class, true_class,
                                  pred_seg, true_seg,
                                  attention_maps,
                                  pred_forensic, true_forensic):
    B, C = pred_class.shape
    n_att = len(attention_maps)

    # tiny glue: one-hot labels (kernel does CE via log-sum-exp)
    onehot = jax.nn.one_hot(true_class, C, dtype=jnp.float32)

    # ---- lane-dense views (pad only ragged tails) ----
    pseg_t, seg_rows8 = _prep_stream(pred_seg)
    tseg_t, tseg_rows8 = _prep_stream(true_seg)
    assert seg_rows8 == tseg_rows8
    att_prep = [_prep_stream(a) for a in attention_maps]
    att_t = [a for a, _ in att_prep]
    att_rows8 = [r for _, r in att_prep]

    inv_n_seg = 1.0 / float(int(pred_seg.size))
    inv_att = [1.0 / float(int(a.size)) for a in attention_maps]

    # ---- VMEM-budgeted tile size (generation aware) ----
    vmem_cap = _vmem_capacity_bytes()
    n_streams = 2 + n_att
    stream_budget = min(32 << 20, vmem_cap // 3)   # double-buffered stream blocks
    tile_rows = stream_budget // (n_streams * 2 * _LANE * 4)
    tile_rows = max(8, min(1024, (tile_rows // 8) * 8))

    seg_bm = min(tile_rows, seg_rows8)
    seg_tiles = _cdiv(seg_rows8, seg_bm)
    att_bm = [min(tile_rows, r) for r in att_rows8]
    att_tiles = [_cdiv(r, b) for r, b in zip(att_rows8, att_bm)]

    tiles_max = max([seg_tiles] + att_tiles)
    n_split = 2 if tiles_max >= 2 else 1   # v7x: shard across both TCs; cheap on 1-TC chips
    tps = _cdiv(tiles_max, n_split)
    total_tiles = n_split * tps

    att_params = tuple(zip(att_bm, att_rows8, att_tiles, inv_att))

    kernel = functools.partial(
        _loss_kernel, n_att, tps, total_tiles, inv_n_seg,
        seg_bm, seg_rows8, seg_tiles, att_params)

    def const_spec(shape):
        return pl.BlockSpec(shape, lambda c, t: (0, 0))

    def stream_spec(bm, tiles):
        # Clamped index: no new DMA issued once this stream is exhausted.
        return pl.BlockSpec(
            (bm, _LANE),
            lambda c, t, _tiles=tiles: (jnp.minimum(c * tps + t, _tiles - 1), 0))

    in_specs = ([const_spec(pred_class.shape),
                 const_spec(onehot.shape),
                 const_spec(pred_forensic.shape),
                 const_spec(true_forensic.shape),
                 stream_spec(seg_bm, seg_tiles),
                 stream_spec(seg_bm, seg_tiles)]
                + [stream_spec(b, ti) for b, ti in zip(att_bm, att_tiles)])

    inputs = [pred_class, onehot, pred_forensic, true_forensic,
              pseg_t, tseg_t] + att_t

    buf_bytes = sum(2 * b * _LANE * 4 for b in [seg_bm, seg_bm] + att_bm)
    vmem_limit = int(min((vmem_cap * 3) // 4,
                         max(32 << 20, buf_bytes + (16 << 20))))

    big_elems = (int(pseg_t.size) + int(tseg_t.size)
                 + sum(int(a.size) for a in att_t))
    bytes_accessed = (sum(int(a.size) * a.dtype.itemsize for a in inputs)
                      + n_split * 8 * 128 * 4)
    flops = (8 * big_elems + 16 * int(pred_class.size)
             + 4 * int(pred_forensic.size))
    transcendentals = int(pseg_t.size) + 2 * int(pred_class.size)

    out = pl.pallas_call(
        kernel,
        out_shape=jax.ShapeDtypeStruct((n_split * 8, 128), jnp.float32),
        grid_spec=pltpu.PrefetchScalarGridSpec(
            num_scalar_prefetch=0,
            grid=(n_split, tps),
            in_specs=in_specs,
            out_specs=pl.BlockSpec((8, 128), lambda c, t: (c, 0)),
            scratch_shapes=[pltpu.VMEM((8, _LANE), jnp.float32),
                            pltpu.VMEM((8, _LANE), jnp.float32)]),
        compiler_params=pltpu.CompilerParams(
            dimension_semantics=("parallel", "arbitrary"),
            vmem_limit_bytes=vmem_limit),
        cost_estimate=pl.CostEstimate(flops=flops,
                                      transcendentals=transcendentals,
                                      bytes_accessed=bytes_accessed),
    )(*inputs)

    # per-slice partial losses live at rows 0, 8, 16, ...
    return jnp.sum(out[::8, 0])


def _reference_loss(pred_class, true_class, pred_seg, true_seg,
                    attention_maps, pred_forensic, true_forensic):
    # plain-JAX reference (mirrors the PyTorch module)
    logits = pred_class.astype(jnp.float32)
    logz = jax.scipy.special.logsumexp(logits, axis=-1)
    picked = jnp.take_along_axis(logits, true_class[:, None], axis=-1)[:, 0]
    cls = jnp.mean(logz - picked)
    p = pred_seg.astype(jnp.float32)
    t = true_seg.astype(jnp.float32)
    bce = jnp.mean(-(t * jnp.maximum(jnp.log(p), -100.0)
                     + (1.0 - t) * jnp.maximum(jnp.log(1.0 - p), -100.0)))
    att = sum(jnp.mean(a) for a in attention_maps)
    mse = jnp.mean((pred_forensic.astype(jnp.float32)
                    - true_forensic.astype(jnp.float32)) ** 2)
    return cls + SEG_WEIGHT * bce + ATT_WEIGHT * att + FORENSIC_WEIGHT * mse


if __name__ == "__main__":
    key = jax.random.PRNGKey(0)
    kc, kl, ks, kt, ka1, ka2, kpf, ktf = jax.random.split(key, 8)

    B, C, H, W, F = 2, 4, 16, 16, 32

    pred_class = jax.random.normal(kc, (B, C), dtype=jnp.float32)
    true_class = jax.random.randint(kl, (B,), 0, C, dtype=jnp.int32)

    pred_seg = jax.nn.sigmoid(jax.random.normal(ks, (B, 1, H, W), dtype=jnp.float32))
    true_seg = (jax.random.uniform(kt, (B, 1, H, W)) > 0.5).astype(jnp.float32)

    attention_maps = [
        jax.nn.softmax(jax.random.normal(ka1, (B, 1, H, W), dtype=jnp.float32)),
        jax.nn.softmax(jax.random.normal(ka2, (B, 1, H, W), dtype=jnp.float32)),
    ]

    pred_forensic = jax.random.normal(kpf, (B, F), dtype=jnp.float32)
    true_forensic = jax.random.normal(ktf, (B, F), dtype=jnp.float32)

    total = hybrid_forgery_detection_loss(
        pred_class, true_class, pred_seg, true_seg,
        attention_maps, pred_forensic, true_forensic)
    total = jax.block_until_ready(total)

    ref = _reference_loss(pred_class, true_class, pred_seg, true_seg,
                          attention_maps, pred_forensic, true_forensic)

    assert jnp.isfinite(total), "non-finite loss"
    assert jnp.allclose(total, ref, rtol=1e-5, atol=1e-5), (total, ref)
    print("KERNEL_OK")
</pallas_src>

<mosaic_0001>
module attributes {stable_mosaic.version = 11 : i64} {
  func.func @_loss_kernel(%arg0: i32, %arg1: i32, %arg2: memref<2x4xf32, #tpu.memory_space<vmem>>, %arg3: memref<2x4xf32, #tpu.memory_space<vmem>>, %arg4: memref<2x32xf32, #tpu.memory_space<vmem>>, %arg5: memref<2x32xf32, #tpu.memory_space<vmem>>, %arg6: memref<8x512xf32, #tpu.memory_space<vmem>>, %arg7: memref<8x512xf32, #tpu.memory_space<vmem>>, %arg8: memref<8x512xf32, #tpu.memory_space<vmem>>, %arg9: memref<8x512xf32, #tpu.memory_space<vmem>>, %arg10: memref<8x128xf32, #tpu.memory_space<vmem>>, %arg11: memref<8x512xf32, #tpu.memory_space<vmem>>, %arg12: memref<8x512xf32, #tpu.memory_space<vmem>>) attributes {dimension_semantics = [#tpu.dimension_semantics<parallel>, #tpu.dimension_semantics<arbitrary>], iteration_bounds = array<i64: 1, 1>, scalar_prefetch = 0 : i64, scratch_operands = 2 : i64, tpu.core_type = #tpu.core_type<tc>, window_params = [{pipeline_mode = #tpu.pipeline_mode<synchronous>, transform_indices = @transform_0, window_bounds = array<i64: 2, 4>}, {pipeline_mode = #tpu.pipeline_mode<synchronous>, transform_indices = @transform_1, window_bounds = array<i64: 2, 4>}, {pipeline_mode = #tpu.pipeline_mode<synchronous>, transform_indices = @transform_2, window_bounds = array<i64: 2, 32>}, {pipeline_mode = #tpu.pipeline_mode<synchronous>, transform_indices = @transform_3, window_bounds = array<i64: 2, 32>}, {transform_indices = @transform_4, window_bounds = array<i64: 8, 512>}, {transform_indices = @transform_5, window_bounds = array<i64: 8, 512>}, {transform_indices = @transform_6, window_bounds = array<i64: 8, 512>}, {transform_indices = @transform_7, window_bounds = array<i64: 8, 512>}, {transform_indices = @transform_8, window_bounds = array<i64: 8, 128>}]} {
    %c0_i32 = arith.constant 0 : i32
    %0 = arith.cmpi eq, %arg1, %c0_i32 : i32
    %1 = arith.extui %0 : i1 to i32
    %c0_i32_0 = arith.constant 0 : i32
    %2 = arith.cmpi ne, %1, %c0_i32_0 : i32
    scf.if %2 {
      %cst_26 = arith.constant 0.000000e+00 : f32
      %31 = vector.broadcast %cst_26 : f32 to vector<8x512xf32>
      %c0_27 = arith.constant 0 : index
      %c0_28 = arith.constant 0 : index
      %32 = vector.load %arg11[%c0_27, %c0_28] : memref<8x512xf32, #tpu.memory_space<vmem>>, vector<8x512xf32>
      tpu.vector_store %arg11[%c0_27, %c0_28], %31 {strides = array<i32>} : memref<8x512xf32, #tpu.memory_space<vmem>>, vector<8x512xf32>,
      %cst_29 = arith.constant 0.000000e+00 : f32
      %33 = vector.broadcast %cst_29 : f32 to vector<8x512xf32>
      %c0_30 = arith.constant 0 : index
      %c0_31 = arith.constant 0 : index
      %34 = vector.load %arg12[%c0_30, %c0_31] : memref<8x512xf32, #tpu.memory_space<vmem>>, vector<8x512xf32>
      tpu.vector_store %arg12[%c0_30, %c0_31], %33 {strides = array<i32>} : memref<8x512xf32, #tpu.memory_space<vmem>>, vector<8x512xf32>,
    } else {
    }
    %c0 = arith.constant 0 : index
    %c0_1 = arith.constant 0 : index
    %3 = vector.load %arg6[%c0, %c0_1] : memref<8x512xf32, #tpu.memory_space<vmem>>, vector<8x512xf32>
    %c0_2 = arith.constant 0 : index
    %c0_3 = arith.constant 0 : index
    %4 = vector.load %arg7[%c0_2, %c0_3] : memref<8x512xf32, #tpu.memory_space<vmem>>, vector<8x512xf32>
    %cst = arith.constant 5.000000e-01 : f32
    %5 = vector.broadcast %cst : f32 to vector<8x512xf32>
    %6 = arith.cmpf oge, %4, %5 : vector<8x512xf32>
    %cst_4 = arith.constant 1.000000e+00 : f32
    %7 = vector.broadcast %cst_4 : f32 to vector<8x512xf32>
    %8 = arith.subf %7, %3 : vector<8x512xf32>
    %9 = arith.select %6, %3, %8 : vector<8x512xi1>, vector<8x512xf32>
    %10 = math.log %9 : vector<8x512xf32>
    %cst_5 = arith.constant -1.000000e+02 : f32
    %11 = vector.broadcast %cst_5 : f32 to vector<8x512xf32>
    %12 = arith.maximumf %10, %11 : vector<8x512xf32>
    %c0_6 = arith.constant 0 : index
    %c0_7 = arith.constant 0 : index
    %13 = vector.load %arg11[%c0_6, %c0_7] : memref<8x512xf32, #tpu.memory_space<vmem>>, vector<8x512xf32>
    %14 = arith.addf %13, %12 : vector<8x512xf32>
    %c0_8 = arith.constant 0 : index
    %c0_9 = arith.constant 0 : index
    %15 = vector.load %arg11[%c0_8, %c0_9] : memref<8x512xf32, #tpu.memory_space<vmem>>, vector<8x512xf32>
    tpu.vector_store %arg11[%c0_8, %c0_9], %14 {strides = array<i32>} : memref<8x512xf32, #tpu.memory_space<vmem>>, vector<8x512xf32>,
    %c0_10 = arith.constant 0 : index
    %c0_11 = arith.constant 0 : index
    %16 = vector.load %arg8[%c0_10, %c0_11] : memref<8x512xf32, #tpu.memory_space<vmem>>, vector<8x512xf32>
    %c0_12 = arith.constant 0 : index
    %c0_13 = arith.constant 0 : index
    %17 = vector.load %arg12[%c0_12, %c0_13] : memref<8x512xf32, #tpu.memory_space<vmem>>, vector<8x512xf32>
    %cst_14 = arith.constant 0.001953125 : f32
    %18 = vector.broadcast %cst_14 : f32 to vector<8x512xf32>
    %19 = arith.mulf %16, %18 : vector<8x512xf32>
    %20 = arith.addf %17, %19 : vector<8x512xf32>
    %c0_15 = arith.constant 0 : index
    %c0_16 = arith.constant 0 : index
    %21 = vector.load %arg12[%c0_15, %c0_16] : memref<8x512xf32, #tpu.memory_space<vmem>>, vector<8x512xf32>
    tpu.vector_store %arg12[%c0_15, %c0_16], %20 {strides = array<i32>} : memref<8x512xf32, #tpu.memory_space<vmem>>, vector<8x512xf32>,
    %c0_17 = arith.constant 0 : index
    %c0_18 = arith.constant 0 : index
    %22 = vector.load %arg9[%c0_17, %c0_18] : memref<8x512xf32, #tpu.memory_space<vmem>>, vector<8x512xf32>
    %c0_19 = arith.constant 0 : index
    %c0_20 = arith.constant 0 : index
    %23 = vector.load %arg12[%c0_19, %c0_20] : memref<8x512xf32, #tpu.memory_space<vmem>>, vector<8x512xf32>
    %cst_21 = arith.constant 0.001953125 : f32
    %24 = vector.broadcast %cst_21 : f32 to vector<8x512xf32>
    %25 = arith.mulf %22, %24 : vector<8x512xf32>
    %26 = arith.addf %23, %25 : vector<8x512xf32>
    %c0_22 = arith.constant 0 : index
    %c0_23 = arith.constant 0 : index
    %27 = vector.load %arg12[%c0_22, %c0_23] : memref<8x512xf32, #tpu.memory_space<vmem>>, vector<8x512xf32>
    tpu.vector_store %arg12[%c0_22, %c0_23], %26 {strides = array<i32>} : memref<8x512xf32, #tpu.memory_space<vmem>>, vector<8x512xf32>,
    %c0_i32_24 = arith.constant 0 : i32
    %28 = arith.cmpi eq, %arg1, %c0_i32_24 : i32
    %29 = arith.extui %28 : i1 to i32
    %c0_i32_25 = arith.constant 0 : i32
    %30 = arith.cmpi ne, %29, %c0_i32_25 : i32
    scf.if %30 {
      %c0_26 = arith.constant 0 : index
      %c0_27 = arith.constant 0 : index
      %31 = vector.load %arg2[%c0_26, %c0_27] : memref<2x4xf32, #tpu.memory_space<vmem>>, vector<2x4xf32>
      %c0_28 = arith.constant 0 : index
      %c0_29 = arith.constant 0 : index
      %32 = vector.load %arg3[%c0_28, %c0_29] : memref<2x4xf32, #tpu.memory_space<vmem>>, vector<2x4xf32>
      %cst_30 = arith.constant dense<0xFF800000> : vector<2xf32>
      %33 = vector.multi_reduction <maximumf>, %31, %cst_30 [1] : vector<2x4xf32> to vector<2xf32>
      %34 = vector.shape_cast %33 : vector<2xf32> to vector<2x1xf32>
      %35 = vector.broadcast %34 : vector<2x1xf32> to vector<2x4xf32>
      %36 = arith.subf %31, %35 : vector<2x4xf32>
      %37 = math.exp %36 : vector<2x4xf32>
      %cst_31 = arith.constant dense<0.000000e+00> : vector<2xf32>
      %38 = vector.multi_reduction <add>, %37, %cst_31 [1] : vector<2x4xf32> to vector<2xf32>
      %39 = vector.shape_cast %38 : vector<2xf32> to vector<2x1xf32>
      %40 = math.log %39 : vector<2x1xf32>
      %41 = arith.addf %40, %34 : vector<2x1xf32>
      %42 = arith.mulf %32, %31 : vector<2x4xf32>
      %cst_32 = arith.constant dense<0.000000e+00> : vector<2xf32>
      %43 = vector.multi_reduction <add>, %42, %cst_32 [1] : vector<2x4xf32> to vector<2xf32>
      %44 = vector.shape_cast %43 : vector<2xf32> to vector<2x1xf32>
      %45 = arith.subf %41, %44 : vector<2x1xf32>
      %46 = vector.shape_cast %45 : vector<2x1xf32> to vector<1x2x1xf32>
      %cst_33 = arith.constant dense<0.000000e+00> : vector<1xf32>
      %47 = vector.multi_reduction <add>, %46, %cst_33 [1, 2] : vector<1x2x1xf32> to vector<1xf32>
      %48 = vector.shape_cast %47 : vector<1xf32> to vector<1x1x1xf32>
      %49 = vector.extract %48[0, 0, 0] : f32 from vector<1x1x1xf32>
      %cst_34 = arith.constant 2.000000e+00 : f32
      %50 = arith.divf %49, %cst_34 : f32
      %c0_35 = arith.constant 0 : index
      %c0_36 = arith.constant 0 : index
      %51 = vector.load %arg4[%c0_35, %c0_36] : memref<2x32xf32, #tpu.memory_space<vmem>>, vector<2x32xf32>
      %c0_37 = arith.constant 0 : index
      %c0_38 = arith.constant 0 : index
      %52 = vector.load %arg5[%c0_37, %c0_38] : memref<2x32xf32, #tpu.memory_space<vmem>>, vector<2x32xf32>
      %53 = arith.subf %51, %52 : vector<2x32xf32>
      %54 = arith.mulf %53, %53 : vector<2x32xf32>
      %55 = vector.shape_cast %54 : vector<2x32xf32> to vector<1x2x32xf32>
      %cst_39 = arith.constant dense<0.000000e+00> : vector<1xf32>
      %56 = vector.multi_reduction <add>, %55, %cst_39 [1, 2] : vector<1x2x32xf32> to vector<1xf32>
      %57 = vector.shape_cast %56 : vector<1xf32> to vector<1x1x1xf32>
      %58 = vector.extract %57[0, 0, 0] : f32 from vector<1x1x1xf32>
      %cst_40 = arith.constant 6.400000e+01 : f32
      %59 = arith.divf %58, %cst_40 : f32
      %c0_41 = arith.constant 0 : index
      %c0_42 = arith.constant 0 : index
      %60 = vector.load %arg11[%c0_41, %c0_42] : memref<8x512xf32, #tpu.memory_space<vmem>>, vector<8x512xf32>
      %61 = vector.shape_cast %60 : vector<8x512xf32> to vector<1x8x512xf32>
      %cst_43 = arith.constant dense<0.000000e+00> : vector<1xf32>
      %62 = vector.multi_reduction <add>, %61, %cst_43 [1, 2] : vector<1x8x512xf32> to vector<1xf32>
      %63 = vector.shape_cast %62 : vector<1xf32> to vector<1x1x1xf32>
      %64 = vector.extract %63[0, 0, 0] : f32 from vector<1x1x1xf32>
      %cst_44 = arith.constant 0.000000e+00 : f32
      %65 = arith.subf %cst_44, %64 : f32
      %cst_45 = arith.constant 0.001953125 : f32
      %66 = arith.mulf %65, %cst_45 : f32
      %c0_46 = arith.constant 0 : index
      %c0_47 = arith.constant 0 : index
      %67 = vector.load %arg12[%c0_46, %c0_47] : memref<8x512xf32, #tpu.memory_space<vmem>>, vector<8x512xf32>
      %68 = vector.shape_cast %67 : vector<8x512xf32> to vector<1x8x512xf32>
      %cst_48 = arith.constant dense<0.000000e+00> : vector<1xf32>
      %69 = vector.multi_reduction <add>, %68, %cst_48 [1, 2] : vector<1x8x512xf32> to vector<1xf32>
      %70 = vector.shape_cast %69 : vector<1xf32> to vector<1x1x1xf32>
      %71 = vector.extract %70[0, 0, 0] : f32 from vector<1x1x1xf32>
      %c0_i32_49 = arith.constant 0 : i32
      %72 = arith.cmpi eq, %arg0, %c0_i32_49 : i32
      %cst_50 = arith.constant 5.000000e-01 : f32
      %73 = arith.mulf %cst_50, %59 : f32
      %74 = arith.addf %50, %73 : f32
      %cst_51 = arith.constant 0.000000e+00 : f32
      %75 = arith.select %72, %74, %cst_51 : f32
      %cst_52 = arith.constant 1.000000e+00 : f32
      %76 = arith.mulf %cst_52, %66 : f32
      %77 = arith.addf %75, %76 : f32
      %cst_53 = arith.constant 1.000000e-01 : f32
      %78 = arith.mulf %cst_53, %71 : f32
      %79 = arith.addf %77, %78 : f32
      %cst_54 = arith.constant 0.000000e+00 : f32
      %80 = vector.broadcast %cst_54 : f32 to vector<8x128xf32>
      %81 = vector.broadcast %79 : f32 to vector<8x128xf32>
      %82 = arith.addf %80, %81 : vector<8x128xf32>
      %c0_55 = arith.constant 0 : index
      %c0_56 = arith.constant 0 : index
      %83 = vector.load %arg10[%c0_55, %c0_56] : memref<8x128xf32, #tpu.memory_space<vmem>>, vector<8x128xf32>
      tpu.vector_store %arg10[%c0_55, %c0_56], %82 {strides = array<i32>} : memref<8x128xf32, #tpu.memory_space<vmem>>, vector<8x128xf32>,
    } else {
    }
    return
  }
  func.func @transform_0(%arg0: i32, %arg1: i32) -> (i32, i32) {
    %c0_i32 = arith.constant 0 : i32
    %c0_i32_0 = arith.constant 0 : i32
    %c0_i32_1 = arith.constant 0 : i32
    return %c0_i32, %c0_i32_0 : i32, i32
  }
  func.func @transform_1(%arg0: i32, %arg1: i32) -> (i32, i32) {
    %c0_i32 = arith.constant 0 : i32
    %c0_i32_0 = arith.constant 0 : i32
    %c0_i32_1 = arith.constant 0 : i32
    return %c0_i32, %c0_i32_0 : i32, i32
  }
  func.func @transform_2(%arg0: i32, %arg1: i32) -> (i32, i32) {
    %c0_i32 = arith.constant 0 : i32
    %c0_i32_0 = arith.constant 0 : i32
    %c0_i32_1 = arith.constant 0 : i32
    return %c0_i32, %c0_i32_0 : i32, i32
  }
  func.func @transform_3(%arg0: i32, %arg1: i32) -> (i32, i32) {
    %c0_i32 = arith.constant 0 : i32
    %c0_i32_0 = arith.constant 0 : i32
    %c0_i32_1 = arith.constant 0 : i32
    return %c0_i32, %c0_i32_0 : i32, i32
  }
  func.func @transform_4(%arg0: i32, %arg1: i32) -> (i32, i32) {
    %c1_i32 = arith.constant 1 : i32
    %0 = arith.muli %arg0, %c1_i32 : i32
    %1 = arith.addi %0, %arg1 : i32
    %c0_i32 = arith.constant 0 : i32
    %2 = arith.minsi %1, %c0_i32 : i32
    %c0_i32_0 = arith.constant 0 : i32
    %c0_i32_1 = arith.constant 0 : i32
    return %2, %c0_i32_0 : i32, i32
  }
  func.func @transform_5(%arg0: i32, %arg1: i32) -> (i32, i32) {
    %c1_i32 = arith.constant 1 : i32
    %0 = arith.muli %arg0, %c1_i32 : i32
    %1 = arith.addi %0, %arg1 : i32
    %c0_i32 = arith.constant 0 : i32
    %2 = arith.minsi %1, %c0_i32 : i32
    %c0_i32_0 = arith.constant 0 : i32
    %c0_i32_1 = arith.constant 0 : i32
    return %2, %c0_i32_0 : i32, i32
  }
  func.func @transform_6(%arg0: i32, %arg1: i32) -> (i32, i32) {
    %c1_i32 = arith.constant 1 : i32
    %0 = arith.muli %arg0, %c1_i32 : i32
    %1 = arith.addi %0, %arg1 : i32
    %c0_i32 = arith.constant 0 : i32
    %2 = arith.minsi %1, %c0_i32 : i32
    %c0_i32_0 = arith.constant 0 : i32
    %c0_i32_1 = arith.constant 0 : i32
    return %2, %c0_i32_0 : i32, i32
  }
  func.func @transform_7(%arg0: i32, %arg1: i32) -> (i32, i32) {
    %c1_i32 = arith.constant 1 : i32
    %0 = arith.muli %arg0, %c1_i32 : i32
    %1 = arith.addi %0, %arg1 : i32
    %c0_i32 = arith.constant 0 : i32
    %2 = arith.minsi %1, %c0_i32 : i32
    %c0_i32_0 = arith.constant 0 : i32
    %c0_i32_1 = arith.constant 0 : i32
    return %2, %c0_i32_0 : i32, i32
  }
  func.func @transform_8(%arg0: i32, %arg1: i32) -> (i32, i32) {
    %c0_i32 = arith.constant 0 : i32
    %c0_i32_0 = arith.constant 0 : i32
    return %arg0, %c0_i32 : i32, i32
  }
}

</mosaic_0001>

<bundles_post_ra>
// kernel: tpu_custom_call.1
= control target key start
LH: loop header
LB: loop body
LE: loop exit
PB: predicated region body
PF: predicated region fallthrough
CT: control target
= control target key end

     0   :  { %13 = vsyncpa [#allocation5], 0  ;;  %s617_s0 = inlined_call_operand.hbm [shape: f32[2,4], index: 0, kind: input, shape index: {}]   ;;  %s618_s1 = inlined_call_operand.hbm [shape: f32[2,4], index: 1, kind: input, shape index: {}]   ;;  %s619_s2 = inlined_call_operand.vmem [shape: f32[2,32], index: 2, kind: input, shape index: {}]   ;;  %s620_s3 = inlined_call_operand.vmem [shape: f32[2,32], index: 3, kind: input, shape index: {}]   ;;  %s621_s4 = inlined_call_operand.hbm [shape: f32[8,512], index: 4, kind: input, shape index: {}]   ;;  %s622_s5 = inlined_call_operand.hbm [shape: f32[8,512], index: 5, kind: input, shape index: {}]   ;;  %s623_s6 = inlined_call_operand.hbm [shape: f32[8,512], index: 6, kind: input, shape index: {}]   ;;  %s624_s7 = inlined_call_operand.hbm [shape: f32[8,512], index: 7, kind: input, shape index: {}]   ;;  %s625_s8 = inlined_call_operand.hbm [shape: f32[8,128], index: 8, kind: output, shape index: {}]  }
   0x1   :  { %14 = vsyncpa [#allocation8], 0 }
   0x2   :  { %15 = vsyncpa [#allocation11], 0 }
   0x3   :  { %16 = vsyncpa [#allocation14], 0 }
   0x4   :  { %17 = vsyncpa [#allocation6], 0  ;;  %s534_s27 = smov [#allocation7]   ;;  %s535_s29 = smov [#allocation10]  }
   0x5   :  { %s34_s28 = sshll.u32 %s534_s27, 4  ;;  %s70_s30 = sshll.u32 %s535_s29, 4  ;;  %s35_s28 = int_to_ptr.vmem [resolvable:$true] %s34_s28  ;;  %s71_s30 = int_to_ptr.vmem [resolvable:$true] %s70_s30 }
   0x6   :  { %s392_s9 = scalar_lea.vmem %s35_s28, 32  ;;  %p397_p1 = scmp.lt.s32.totalorder %s35_s28, %s35_s28 }
   0x7   :  { %p393_p0 = scmp.ne.s32.totalorder %s35_s28, %s392_s9  ;;  %p398_p2 = scmp.lt.s32.totalorder %s392_s9, %s392_s9 }
   0x9   :  { %p399_p3 = por %p398_p2, %p397_p1 }
   0xb   :  { %p400_p4 = pnand %p399_p3, %p393_p0 }
   0xd   :  { %403 = shalt.err (!%p400_p4)
}
   0xe   :  { %37 = dma.hbm_to_vmem [thread:$0]  %s618_s1, 32, %s35_s28, [#allocation8]  }
   0xf   :  { %s412_s12 = scalar_lea.vmem %s71_s30, 512  ;;  %p417_p6 = scmp.lt.s32.totalorder %s71_s30, %s71_s30 }
  0x10   :  { %p413_p5 = scmp.ne.s32.totalorder %s71_s30, %s412_s12  ;;  %p418_p7 = scmp.lt.s32.totalorder %s412_s12, %s412_s12 }
  0x12   :  { %p419_p8 = por %p418_p7, %p417_p6 }
  0x14   :  { %p420_p9 = pnand %p419_p8, %p413_p5 }
  0x16   :  { %423 = shalt.err (!%p420_p9)
}
  0x17   :  { %73 = dma.hbm_to_vmem [thread:$0]  %s622_s5, 512, %s71_s30, [#allocation11]  }
  0x18   :  { %s536_s15 = smov [#allocation4]   ;;  %s537_s17 = smov [#allocation9]  }
  0x19   :  { %s24_s16 = sshll.u32 %s536_s15, 4  ;;  %s54_s18 = sshll.u32 %s537_s17, 4  ;;  %s25_s16 = int_to_ptr.vmem [resolvable:$true] %s24_s16  ;;  %s55_s18 = int_to_ptr.vmem [resolvable:$true] %s54_s18 }
  0x1a   :  { %s432_s19 = scalar_lea.vmem %s25_s16, 32  ;;  %p437_p11 = scmp.lt.s32.totalorder %s25_s16, %s25_s16 }
  0x1b   :  { %p433_p10 = scmp.ne.s32.totalorder %s25_s16, %s432_s19  ;;  %p438_p12 = scmp.lt.s32.totalorder %s432_s19, %s432_s19 }
  0x1d   :  { %p439_p13 = por %p438_p12, %p437_p11 }
  0x1f   :  { %p440_p0 = pnand %p439_p13, %p433_p10 }
  0x21   :  { %443 = shalt.err (!%p440_p0)
}
  0x22   :  { %27 = dma.hbm_to_vmem [thread:$0]  %s617_s0, 32, %s25_s16, [#allocation5]  }
  0x23   :  { %s452_s21 = scalar_lea.vmem %s55_s18, 512  ;;  %p457_p2 = scmp.lt.s32.totalorder %s55_s18, %s55_s18 }
  0x24   :  { %p453_p1 = scmp.ne.s32.totalorder %s55_s18, %s452_s21  ;;  %p458_p3 = scmp.lt.s32.totalorder %s452_s21, %s452_s21 }
  0x26   :  { %p459_p4 = por %p458_p3, %p457_p2 }
  0x28   :  { %p460_p5 = pnand %p459_p4, %p453_p1 }
  0x2a   :  { %463 = shalt.err (!%p460_p5)
}
  0x2b   :  { %57 = dma.hbm_to_vmem [thread:$0]  %s621_s4, 512, %s55_s18, [#allocation8]  }
  0x2c   :  { %s538_s23 = smov [#allocation12]   ;;  %s539_s25 = smov [#allocation13]  }
  0x2d   :  { %s86_s24 = sshll.u32 %s538_s23, 4  ;;  %s102_s26 = sshll.u32 %s539_s25, 4  ;;  %s87_s24 = int_to_ptr.vmem [resolvable:$true] %s86_s24  ;;  %s103_s26 = int_to_ptr.vmem [resolvable:$true] %s102_s26 }
  0x2e   :  { %s472_s27 = scalar_lea.vmem %s87_s24, 512  ;;  %p477_p7 = scmp.lt.s32.totalorder %s87_s24, %s87_s24 }
  0x2f   :  { %p473_p6 = scmp.ne.s32.totalorder %s87_s24, %s472_s27  ;;  %p478_p8 = scmp.lt.s32.totalorder %s472_s27, %s472_s27 }
  0x31   :  { %p479_p9 = por %p478_p8, %p477_p7 }
  0x33   :  { %p480_p10 = pnand %p479_p9, %p473_p6 }
  0x35   :  { %483 = shalt.err (!%p480_p10)
}
  0x36   :  { %89 = dma.hbm_to_vmem [thread:$0]  %s623_s6, 512, %s87_s24, [#allocation11]  }
  0x37   :  { %s492_s29 = scalar_lea.vmem %s103_s26, 512  ;;  %p497_p12 = scmp.lt.s32.totalorder %s103_s26, %s103_s26 }
  0x38   :  { %p493_p11 = scmp.ne.s32.totalorder %s103_s26, %s492_s29  ;;  %p498_p13 = scmp.lt.s32.totalorder %s492_s29, %s492_s29 }
  0x3a   :  { %p499_p0 = por %p498_p13, %p497_p12 }
  0x3c   :  { %p500_p1 = pnand %p499_p0, %p493_p11 }
  0x3e   :  { %503 = shalt.err (!%p500_p1)
}
  0x3f   :  { %105 = dma.hbm_to_vmem [thread:$0]  %s624_s7, 512, %s103_s26, [#allocation14]  }
  0x40   :  { %524 = dma.done.wait [#allocation5], 32  }
  0x41   :  { %525 = vsyncadd [#allocation5], 4294967264 }
  0x42   :  { %526 = dma.done.wait [#allocation8], 544  }
  0x43   :  { %527 = vsyncadd [#allocation8], 4294966752 }
  0x44   :  { %528 = dma.done.wait [#allocation11], 1024  }
  0x45   :  { %529 = vsyncadd [#allocation11], 4294966272 }
  0x46   :  { %530 = dma.done.wait [#allocation14], 512  }
  0x47   :  { %531 = vsyncadd [#allocation14], 4294966784  ;;  %vm237_vm0 = vcmask 25600   ;;  %v235_v0 = vld [vmem:[#allocation4] sm:$0x3]  ;;  %v192_v13 = vld [vmem:[#allocation12] sm:$0xff] }
  0x48   :  { %v238_v1 = vsel %vm237_vm0, %v235_v0, -inf  ;;  %v236_v2 = vld [vmem:[#allocation7] sm:$0x3]  ;;  %v269_v10 = vld [vmem:[%s619_s2] sm:$0x3]  ;;  %v193_v14 = vld [vmem:[#allocation12 + $0x8] sm:$0xff] }
  0x49   :  { %239 = vmax.xlane.f32.xlu0 %v238_v1  ;;  %v250_v3 = vmul.f32 %v236_v2, %v235_v0  ;;  %v270_v11 = vld [vmem:[%s620_s3] sm:$0x3]  ;;  %v212_v15 = vld [vmem:[#allocation13] sm:$0xff]  ;;  %v200_v16 = vmul.f32 0.001953125, %v192_v13  ;;  %v201_v17 = vmul.f32 0.001953125, %v193_v14  ;;  %v213_v18 = vld [vmem:[#allocation13 + $0x8] sm:$0xff] }
  0x4a   :  { %v271_v12 = vsub.f32 %v269_v10, %v270_v11  ;;  %v220_v19 = vmul.f32 0.001953125, %v212_v15  ;;  %v194_v21 = vld [vmem:[#allocation12 + $0x10] sm:$0xff]  ;;  %v221_v23 = vmul.f32 0.001953125, %v213_v18  ;;  %vm273_vm1 = vcmask 254976   ;;  %v195_v28 = vld [vmem:[#allocation12 + $0x18] sm:$0xff]  ;;  %v148_v38 = vld [vmem:[#allocation9] sm:$0xff] }
  0x4b   :  { %v251_v4 = vsel %vm237_vm0, %v250_v3, 0.0  ;;  %v214_v22 = vld [vmem:[#allocation13 + $0x10] sm:$0xff]  ;;  %v202_v24 = vmul.f32 0.001953125, %v194_v21  ;;  %v215_v29 = vld [vmem:[#allocation13 + $0x18] sm:$0xff]  ;;  %v203_v31 = vmul.f32 0.001953125, %v195_v28  ;;  %v149_v39 = vld [vmem:[#allocation9 + $0x8] sm:$0xff] }
  0x4c   :  { %252 = vadd.xlane.f32.xlu1 %v251_v4  ;;  %v272_v20 = vmul.f32 %v271_v12, %v271_v12  ;;  %v222_v25 = vmul.f32 0.001953125, %v214_v22  ;;  %v224_v26 = vadd.f32 %v220_v19, %v200_v16  ;;  %v225_v30 = vadd.f32 %v221_v23, %v201_v17  ;;  %v152_v40 = vld [vmem:[#allocation10] sm:$0xff]  ;;  %v153_v41 = vld [vmem:[#allocation10 + $0x8] sm:$0xff]  ;;  %v150_v44 = vld [vmem:[#allocation9 + $0x10] sm:$0xff]  ;;  %s540_s19 = smov [#allocation15]  }
  0x4d   :  { %v223_v32 = vmul.f32 0.001953125, %v215_v29  ;;  %v160_v42 = vsub.f32 1.0, %v148_v38  ;;  %vm156_vm2 = vcmp.ge.f32.partialorder %v152_v40, 0.5  ;;  %v161_v43 = vsub.f32 1.0, %v149_v39  ;;  %v154_v45 = vld [vmem:[#allocation10 + $0x10] sm:$0xff]  ;;  %v151_v49 = vld [vmem:[#allocation9 + $0x18] sm:$0xff] }
  0x4e   :  { %v274_v27 = vsel %vm273_vm1, %v272_v20, 0.0  ;;  %v226_v33 = vadd.f32 %v222_v25, %v202_v24  ;;  %v309_v34 = vadd.f32 %v225_v30, %v224_v26  ;;  %vm157_vm3 = vcmp.ge.f32.partialorder %v153_v41, 0.5  ;;  %v155_v50 = vld [vmem:[#allocation10 + $0x18] sm:$0xff]  ;;  %s337_s1 = sshll.u32 %s540_s19, 4  ;;  %s338_s1 = int_to_ptr.vmem [resolvable:$true] %s337_s1 }
  0x4f   :  { %v227_v35 = vadd.f32 %v223_v32, %v203_v31  ;;  %v164_v46 = vsel %vm156_vm2, %v148_v38, %v160_v42  ;;  %v162_v47 = vsub.f32 1.0, %v150_v44  ;;  %v165_v48 = vsel %vm157_vm3, %v149_v39, %v161_v43  ;;  %s504_s22 = scalar_lea.vmem %s338_s1, 128  ;;  %p509_p3 = scmp.lt.s32.totalorder %s338_s1, %s338_s1 }
  0x50   :  { %v310_v36 = vadd.f32 %v309_v34, %v226_v33  ;;  %vm158_vm4 = vcmp.ge.f32.partialorder %v154_v45, 0.5  ;;  %v163_v51 = vsub.f32 1.0, %v151_v49  ;;  %vm159_vm5 = vcmp.ge.f32.partialorder %v155_v50, 0.5  ;;  %p505_p2 = scmp.ne.s32.totalorder %s338_s1, %s504_s22  ;;  %p510_p4 = scmp.lt.s32.totalorder %s504_s22, %s504_s22 }
  0x51   :  { %v166_v52 = vsel %vm158_vm4, %v150_v44, %v162_v47  ;;  %vm255_vm6 = vcmask 1024  }
  0x52   :  { %v311_v37 = vadd.f32 %v310_v36, %v227_v35  ;;  %v167_v53 = vsel %vm159_vm5, %v151_v49, %v163_v51  ;;  %p511_p5 = por %p510_p4, %p509_p3 }
  0x54   :  { %p512_p6 = pnand %p511_p5, %p505_p2 }
  0xd2   :  { %v604_v5 = vpop.xlane.xlu0 %239 }
  0xd3   :  { %v241_v6 = vsub.f32 %v235_v0, %v604_v5 }
  0xd5   :  { %v242_v7 = vmul.f32 1.442695, %v241_v6  ;;  %v253_v6 = vpop.xlane.xlu1 %252 }
  0xd7   :  { %372 = vpow2.f32 %v242_v7 }
  0xd8   :  { %374 = vlog2.f32 %v164_v46 }
  0xd9   :  { %376 = vlog2.f32 %v165_v48 }
  0xda   :  { %378 = vlog2.f32 %v166_v52 }
  0xdb   :  { %380 = vlog2.f32 %v167_v53 }
  0xe4   :  { %v373_v8 = vpop.eup %372 }
  0xe5   :  { %v244_v9 = vsel %vm237_vm0, %v373_v8, 0.0  ;;  %v375_v55 = vpop.eup %374 }
  0xe6   :  { %245 = vadd.xlane.f32.xlu0 %v244_v9  ;;  %v377_v56 = vpop.eup %376  ;;  %v169_v57 = vmul.f32 0.6931472, %v375_v55 }
  0xe7   :  { %v171_v58 = vmul.f32 0.6931472, %v377_v56  ;;  %v379_v59 = vpop.eup %378 }
  0xe8   :  { %v173_v60 = vmul.f32 0.6931472, %v379_v59  ;;  %v176_v61 = vmax.f32 %v169_v57, -100.0  ;;  %v381_v63 = vpop.eup %380 }
  0xe9   :  { %v177_v62 = vmax.f32 %v171_v58, -100.0  ;;  %v175_v1 = vmul.f32 0.6931472, %v381_v63 }
  0xea   :  { %275 = vadd.xlane.f32.xlu0 %v274_v27  ;;  %v178_v2 = vmax.f32 %v173_v60, -100.0 }
  0xeb   :  { %v291_v3 = vadd.f32 %v177_v62, %v176_v61  ;;  %v179_v8 = vmax.f32 %v175_v1, -100.0 }
  0xed   :  { %v292_v9 = vadd.f32 %v291_v3, %v178_v2 }
  0xee   :  { %312 = vadd.xlane.f32.xlu0 %v311_v37 }
  0xef   :  { %v293_v12 = vadd.f32 %v292_v9, %v179_v8 }
 0x16f   :  { %v246_v54 = vpop.xlane.xlu0 %245 }
 0x170   :  { %382 = vlog2.f32 %v246_v54 }
 0x173   :  { %v276_v13 = vpop.xlane.xlu0 %275 }
 0x174   :  { %v277_v14 = vrot.slane %v276_v13, 4 }
 0x176   :  { %v278_v16 = vadd.f32 %v277_v14, %v276_v13 }
 0x177   :  { %v313_v15 = vpop.xlane.xlu0 %312 }
 0x178   :  { %v314_v17 = vrot.slane %v313_v15, 4  ;;  %v279_v18 = vrot.slane %v278_v16, 2 }
 0x17a   :  { %v315_v20 = vadd.f32 %v314_v17, %v313_v15  ;;  %v280_v24 = vadd.f32 %v279_v18, %v278_v16 }
 0x17c   :  { %v316_v23 = vrot.slane %v315_v20, 2  ;;  %v281_v30 = vrot.slane %v280_v24, 1 }
 0x17d   :  { %v383_v0 = vpop.eup %382 }
 0x17e   :  { %v248_v4 = vmul.f32 0.6931472, %v383_v0  ;;  %v317_v29 = vadd.f32 %v316_v23, %v315_v20  ;;  %v282_v35 = vadd.f32 %v281_v30, %v280_v24 }
 0x180   :  { %v249_v7 = vadd.f32 %v248_v4, %v604_v5  ;;  %v318_v36 = vrot.slane %v317_v29, 1 }
 0x182   :  { %v254_v10 = vsub.f32 %v249_v7, %v253_v6  ;;  %v319_v39 = vadd.f32 %v318_v36, %v317_v29 }
 0x184   :  { %v256_v11 = vsel %vm255_vm6, %v254_v10, 0.0 }
 0x185   :  { %257 = vadd.xlane.f32.xlu1 %v256_v11 }
 0x189   :  { %294 = vadd.xlane.f32.xlu1 %v293_v12 }
 0x20e   :  { %v258_v19 = vpop.xlane.xlu1 %257 }
 0x20f   :  { %v259_v21 = vrot.slane %v258_v19, 4 }
 0x211   :  { %v260_v22 = vadd.f32 %v259_v21, %v258_v19 }
 0x212   :  { %v295_v5 = vpop.xlane.xlu1 %294 }
 0x213   :  { %v261_v25 = vrot.slane %v260_v22, 2  ;;  %v296_v26 = vrot.slane %v295_v5, 4 }
 0x215   :  { %v297_v27 = vadd.f32 %v296_v26, %v295_v5  ;;  %v262_v28 = vadd.f32 %v261_v25, %v260_v22 }
 0x217   :  { %v298_v31 = vrot.slane %v297_v27, 2  ;;  %v263_v32 = vrot.slane %v262_v28, 1 }
 0x219   :  { %v299_v33 = vadd.f32 %v298_v31, %v297_v27  ;;  %v264_v34 = vadd.f32 %v263_v32, %v262_v28 }
 0x21b   :  { %357 = vpush %v264_v34  ;;  %v300_v37 = vrot.slane %v299_v33, 1 }
 0x21c   :  { %359 = vpush %v282_v35 }
 0x21d   :  { %v301_v38 = vadd.f32 %v300_v37, %v299_v33 }
 0x21f   :  { %361 = vpush %v301_v38 }
 0x220   :  { %363 = vpush %v319_v39 }
 0x24c   :  { %s358_s2 = spop %357 }
 0x24d   :  { %s360_s3 = spop %359  ;;  %s268_s14 = smul.f32 0.5, %s358_s2 }
 0x24e   :  { %s286_s11 = smul.f32 0.015625, %s360_s3 }
 0x250   :  { %s322_s12 = smul.f32 0.5, %s286_s11  ;;  %s362_s13 = spop %361 }
 0x251   :  { %s303_s15 = ssub.f32 0.0, %s362_s13  ;;  %s364_s16 = spop %363 }
 0x252   :  { %s323_s17 = sadd.f32 %s322_s12, %s268_s14  ;;  %s326_s21 = smul.f32 0.1, %s364_s16 }
 0x253   :  { %s304_s18 = smul.f32 0.001953125, %s303_s15 }
 0x255   :  { %s325_s20 = sadd.f32 %s323_s17, %s304_s18 }
 0x257   :  { %s327_s5 = sadd.f32 %s326_s21, %s325_s20 }
 0x259   :  { %v328_v40 = vstv %s327_s5 }
 0x25a   :  { %330 = vst [vmem:[#allocation15] sm:$0xff] %v328_v40 }
 0x25b   :  { %515 = shalt.err (!%p512_p6)
}
 0x25c   :  { %340 = dma.vmem_to_hbm [thread:$0]  %s338_s1, 128, %s625_s8, [#allocation6]  }
 0x25d   :  { %532 = dma.done.wait [#allocation6], 128  }
 0x25e   :  { %533 = vsyncadd [#allocation6], 4294967168 }
 0x25f   :  { %344 = vsyncpa [#allocation5], 1 }
 0x260   :  { %345 = vsyncpa [#allocation8], 1 }
 0x261   :  { %346 = vsyncpa [#allocation11], 1 }
 0x262   :  { %347 = vsyncpa [#allocation14], 1 }
 0x263   :  { %348 = vsyncpa [#allocation6], 1 }

</bundles_post_ra>
